<compile_context>
chip_gen: v5e
topology: v5e:2x2
jax: 0.10.0
libtpu: 0.0.40
codegen_flags: <defaults>
</compile_context>

<pallas_src>
import jax
import jax.numpy as jnp
from jax.experimental import pallas as pl
from jax.experimental.pallas import tpu as pltpu

ACTION_NAME = "my_action"
OBSERVATION_NAME = "my_observation"

HIDDEN = 16      # matches nn.Linear(obs_dim, 16)
TB_MAX = 4096    # max batch rows per grid step


def _round_up(x, m):
    return (x + m - 1) // m * m


def _policy_mlp_kernel(x_ref, w1_ref, b1_ref, w2_ref, b2_ref, o_ref):
    # x_ref: [tb, obs_dim] f32; weights/biases f32, fully VMEM-resident.
    # Two MXU matmuls with f32 accumulation, tanh on the EUP.
    h = jnp.dot(x_ref[...], w1_ref[...], preferred_element_type=jnp.float32)
    h = jnp.tanh(h + b1_ref[...])
    y = jnp.dot(h, w2_ref[...], preferred_element_type=jnp.float32) + b2_ref[...]
    o_ref[...] = y.astype(o_ref.dtype)


def _choose_batch_tile(B):
    """Batch tile: one block for small B; >=2 blocks for larger B (v7x megacore)."""
    if B <= 512:
        return _round_up(B, 8)
    return min(TB_MAX, _round_up(pl.cdiv(B, 2), 8))


def policy_net_forward(in_dict, params):
    """Forward pass of PolicyNet. Returns {ACTION_NAME: logits} (float32 [B, act_dim])."""
    x = in_dict[OBSERVATION_NAME]          # [B, obs_dim] float32
    B, obs_dim = x.shape
    act_dim = params["w2"].shape[1]

    tb = _choose_batch_tile(B)
    grid = (pl.cdiv(B, tb),)               # ragged last block handled by Pallas masking

    out = pl.pallas_call(
        _policy_mlp_kernel,
        out_shape=jax.ShapeDtypeStruct((B, act_dim), jnp.float32),
        grid=grid,
        in_specs=[
            pl.BlockSpec((tb, obs_dim), lambda i: (i, 0)),       # streamed over batch
            pl.BlockSpec((obs_dim, HIDDEN), lambda i: (0, 0)),   # VMEM-resident weights
            pl.BlockSpec((1, HIDDEN), lambda i: (0, 0)),
            pl.BlockSpec((HIDDEN, act_dim), lambda i: (0, 0)),
            pl.BlockSpec((1, act_dim), lambda i: (0, 0)),
        ],
        out_specs=pl.BlockSpec((tb, act_dim), lambda i: (i, 0)),
        compiler_params=pltpu.CompilerParams(
            dimension_semantics=("parallel",),   # shard batch blocks across v7x's 2 TCs
        ),
    )(x, params["w1"], params["b1"], params["w2"], params["b2"])

    return {ACTION_NAME: out}


def init_params(key, obs_dim, act_dim):
    """Deterministic parameter init mimicking nn.Linear's uniform(-1/sqrt(fan_in), ...)."""
    k1, k2, k3, k4 = jax.random.split(key, 4)
    bound1 = 1.0 / jnp.sqrt(jnp.float32(obs_dim))
    bound2 = 1.0 / jnp.sqrt(jnp.float32(HIDDEN))
    # Stored as [in_features, out_features] (transposed relative to torch's Linear.weight).
    w1 = jax.random.uniform(k1, (obs_dim, HIDDEN), jnp.float32, -bound1, bound1)
    b1 = jax.random.uniform(k2, (1, HIDDEN), jnp.float32, -bound1, bound1)
    w2 = jax.random.uniform(k3, (HIDDEN, act_dim), jnp.float32, -bound2, bound2)
    b2 = jax.random.uniform(k4, (1, act_dim), jnp.float32, -bound2, bound2)
    return {"w1": w1, "b1": b1, "w2": w2, "b2": b2}


if __name__ == "__main__":
    key = jax.random.PRNGKey(0)
    k_obs, k_params = jax.random.split(key)

    batch = 8
    obs_dim = 32   # obs_shapes[OBSERVATION_NAME][0]
    act_dim = 8    # action_logits_shapes[ACTION_NAME][0]

    obs = jax.random.normal(k_obs, (batch, obs_dim), jnp.float32)
    params = init_params(k_params, obs_dim, act_dim)

    out_dict = policy_net_forward({OBSERVATION_NAME: obs}, params)
    logits = jax.block_until_ready(out_dict[ACTION_NAME])

    # Reference check against plain JAX (same math as the PyTorch forward).
    ref = jnp.tanh(obs @ params["w1"] + params["b1"]) @ params["w2"] + params["b2"]
    assert logits.shape == (batch, act_dim)
    assert jnp.allclose(logits, ref, atol=2e-2, rtol=2e-2)

    print("KERNEL_OK")
</pallas_src>

<mosaic_0001>
module attributes {stable_mosaic.version = 11 : i64} {
  func.func @_policy_mlp_kernel(%arg0: i32, %arg1: memref<8x32xf32, #tpu.memory_space<vmem>>, %arg2: memref<32x16xf32, #tpu.memory_space<vmem>>, %arg3: memref<1x16xf32, #tpu.memory_space<vmem>>, %arg4: memref<16x8xf32, #tpu.memory_space<vmem>>, %arg5: memref<1x8xf32, #tpu.memory_space<vmem>>, %arg6: memref<8x8xf32, #tpu.memory_space<vmem>>) attributes {dimension_semantics = [#tpu.dimension_semantics<parallel>], iteration_bounds = array<i64: 1>, scalar_prefetch = 0 : i64, scratch_operands = 0 : i64, tpu.core_type = #tpu.core_type<tc>, window_params = [{transform_indices = @transform_0, window_bounds = array<i64: 8, 32>}, {pipeline_mode = #tpu.pipeline_mode<synchronous>, transform_indices = @transform_1, window_bounds = array<i64: 32, 16>}, {pipeline_mode = #tpu.pipeline_mode<synchronous>, transform_indices = @transform_2, window_bounds = array<i64: 1, 16>}, {pipeline_mode = #tpu.pipeline_mode<synchronous>, transform_indices = @transform_3, window_bounds = array<i64: 16, 8>}, {pipeline_mode = #tpu.pipeline_mode<synchronous>, transform_indices = @transform_4, window_bounds = array<i64: 1, 8>}, {transform_indices = @transform_5, window_bounds = array<i64: 8, 8>}]} {
    %c0 = arith.constant 0 : index
    %c0_0 = arith.constant 0 : index
    %0 = vector.load %arg1[%c0, %c0_0] : memref<8x32xf32, #tpu.memory_space<vmem>>, vector<8x32xf32>
    %c0_1 = arith.constant 0 : index
    %c0_2 = arith.constant 0 : index
    %1 = vector.load %arg2[%c0_1, %c0_2] : memref<32x16xf32, #tpu.memory_space<vmem>>, vector<32x16xf32>
    %cst = arith.constant dense<0.000000e+00> : vector<8x16xf32>
    %2 = tpu.matmul %0, %1, %cst {dimension_numbers = #tpu.dot_dimension_numbers<[1], [0], [0], [1], [0, 0, 1, 1], [], []>} : vector<8x32xf32>, vector<32x16xf32>, vector<8x16xf32> -> vector<8x16xf32>
    %c0_3 = arith.constant 0 : index
    %c0_4 = arith.constant 0 : index
    %3 = vector.load %arg3[%c0_3, %c0_4] : memref<1x16xf32, #tpu.memory_space<vmem>>, vector<1x16xf32>
    %4 = vector.broadcast %3 : vector<1x16xf32> to vector<8x16xf32>
    %5 = arith.addf %2, %4 : vector<8x16xf32>
    %6 = math.tanh %5 : vector<8x16xf32>
    %c0_5 = arith.constant 0 : index
    %c0_6 = arith.constant 0 : index
    %7 = vector.load %arg4[%c0_5, %c0_6] : memref<16x8xf32, #tpu.memory_space<vmem>>, vector<16x8xf32>
    %cst_7 = arith.constant dense<0.000000e+00> : vector<8x8xf32>
    %8 = tpu.matmul %6, %7, %cst_7 {dimension_numbers = #tpu.dot_dimension_numbers<[1], [0], [0], [1], [0, 0, 1, 1], [], []>} : vector<8x16xf32>, vector<16x8xf32>, vector<8x8xf32> -> vector<8x8xf32>
    %c0_8 = arith.constant 0 : index
    %c0_9 = arith.constant 0 : index
    %9 = vector.load %arg5[%c0_8, %c0_9] : memref<1x8xf32, #tpu.memory_space<vmem>>, vector<1x8xf32>
    %10 = vector.broadcast %9 : vector<1x8xf32> to vector<8x8xf32>
    %11 = arith.addf %8, %10 : vector<8x8xf32>
    %c0_10 = arith.constant 0 : index
    %c0_11 = arith.constant 0 : index
    %12 = vector.load %arg6[%c0_10, %c0_11] : memref<8x8xf32, #tpu.memory_space<vmem>>, vector<8x8xf32>
    tpu.vector_store %arg6[%c0_10, %c0_11], %11 {strides = array<i32>} : memref<8x8xf32, #tpu.memory_space<vmem>>, vector<8x8xf32>,
    return
  }
  func.func @transform_0(%arg0: i32) -> (i32, i32) {
    %c0_i32 = arith.constant 0 : i32
    %c0_i32_0 = arith.constant 0 : i32
    return %arg0, %c0_i32 : i32, i32
  }
  func.func @transform_1(%arg0: i32) -> (i32, i32) {
    %c0_i32 = arith.constant 0 : i32
    %c0_i32_0 = arith.constant 0 : i32
    %c0_i32_1 = arith.constant 0 : i32
    return %c0_i32, %c0_i32_0 : i32, i32
  }
  func.func @transform_2(%arg0: i32) -> (i32, i32) {
    %c0_i32 = arith.constant 0 : i32
    %c0_i32_0 = arith.constant 0 : i32
    %c0_i32_1 = arith.constant 0 : i32
    return %c0_i32, %c0_i32_0 : i32, i32
  }
  func.func @transform_3(%arg0: i32) -> (i32, i32) {
    %c0_i32 = arith.constant 0 : i32
    %c0_i32_0 = arith.constant 0 : i32
    %c0_i32_1 = arith.constant 0 : i32
    return %c0_i32, %c0_i32_0 : i32, i32
  }
  func.func @transform_4(%arg0: i32) -> (i32, i32) {
    %c0_i32 = arith.constant 0 : i32
    %c0_i32_0 = arith.constant 0 : i32
    %c0_i32_1 = arith.constant 0 : i32
    return %c0_i32, %c0_i32_0 : i32, i32
  }
  func.func @transform_5(%arg0: i32) -> (i32, i32) {
    %c0_i32 = arith.constant 0 : i32
    %c0_i32_0 = arith.constant 0 : i32
    return %arg0, %c0_i32 : i32, i32
  }
}

</mosaic_0001>

<bundles_post_ra>
// kernel: tpu_custom_call.1
= control target key start
LH: loop header
LB: loop body
LE: loop exit
PB: predicated region body
PF: predicated region fallthrough
CT: control target
= control target key end

     0   :  { %s197_s0 = inlined_call_operand.vmem [shape: f32[8,32], index: 0, kind: input, shape index: {}]   ;;  %s198_s1 = inlined_call_operand.vmem [shape: f32[32,16], index: 1, kind: input, shape index: {}]   ;;  %s199_s2 = inlined_call_operand.vmem [shape: f32[1,16], index: 2, kind: input, shape index: {}]   ;;  %s200_s3 = inlined_call_operand.vmem [shape: f32[16,8], index: 3, kind: input, shape index: {}]   ;;  %s201_s4 = inlined_call_operand.vmem [shape: f32[1,8], index: 4, kind: input, shape index: {}]   ;;  %s202_s5 = inlined_call_operand.hbm [shape: f32[8,8], index: 5, kind: output, shape index: {}]  }
   0x1   :  { %v25_v0 = vld [vmem:[%s198_s1 + $0x18] sm:$0xff]  ;;  %v24_v1 = vld [vmem:[%s198_s1 + $0x10] sm:$0xff]  ;;  %v23_v2 = vld [vmem:[%s198_s1 + $0x8] sm:$0xff] }
   0x2   :  { %46 = vmatpush.msra.mxu0 %v25_v0 }
   0x3   :  { %10 = vsyncpa [#allocation3], 0  ;;  %v22_v3 = vld [vmem:[%s198_s1] sm:$0xff]  ;;  %vm30_vm0 = vcmask 261120   ;;  %v56_v5 = vld [vmem:[%s200_s3 + $0x8] sm:$0xff]  ;;  %vm61_vm1 = vcmask 130048  }
   0x4   :  { %47 = vmatpush.msra.mxu0 %v24_v1  ;;  %v21_v4 = vld [vmem:[%s197_s0] sm:$0xff]  ;;  %79 = vmatpush.msra.mxu1 %v56_v5  ;;  %s136_s9 = smov [#allocation2]   ;;  %s94_s12 = sshll.u32 %s202_s5, 4  ;;  %vm85_vm2 = vcmask 64512   ;;  %s95_s12 = int_to_ptr.hbm [resolvable:$true] %s94_s12 }
   0x5   :  { %v55_v6 = vld [vmem:[%s200_s3] sm:$0xff]  ;;  %s92_s10 = sshll.u32 %s136_s9, 4  ;;  %s93_s10 = int_to_ptr.vmem [resolvable:$true] %s92_s10 }
   0x6   :  { %48 = vmatpush.msra.mxu0 %v23_v2  ;;  %80 = vmatpush.msra.mxu1 %v55_v6  ;;  %v106_v7 = vld [vmem:[%s199_s2] ss:$0 sm:$0xff] }
   0x7   :  { %v107_v11 = vld [vmem:[%s201_s4] ss:$0 sm:$0xff] }
   0x8   :  { %49 = vmatpush.msra.mxu0 %v22_v3 }
   0x9   :  { %103 = vmatmul.msk.f32.vlgmr.msra.gmra.mxu0 %vm30_vm0, %v21_v4 }
  0x86   :  { %v51_v8 = vpop.f32.mrf.mxu0 }
  0x87   :  { %v52_v9 = vadd.f32 %v106_v7, %v51_v8 }
  0x89   :  { %108 = vtanh.f32 %v52_v9 }
  0x8f   :  { %v109_v10 = vpop.eup %108 }
  0x90   :  { %104 = vmatmul.msk.f32.vlgmr.msra.gmra.mxu1 %vm61_vm1, %v109_v10 }
 0x10d   :  { %v82_v12 = vpop.f32.mrf.mxu1 }
 0x10e   :  { %v83_v13 = vadd.f32 %v107_v11, %v82_v12 }
 0x110   :  { %86 = vst.msk [vmem:[#allocation2] sm:$0xff] %vm85_vm2, %v83_v13 }
 0x111   :  { %97 = dma.vmem_to_hbm [thread:$0]  %s93_s10, 128, %s95_s12, [#allocation3]  }
 0x112   :  { %134 = dma.done.wait [#allocation3], 128  }
 0x113   :  { %135 = vsyncadd [#allocation3], 4294967168 }
 0x114   :  { %102 = vsyncpa [#allocation3], 1 }

</bundles_post_ra>
